<compile_context>
chip_gen: v6e
topology: v6e:2x2x1
jax: 0.10.0
libtpu: 0.0.40
codegen_flags: <defaults>
</compile_context>

<pallas_src>
import math

import jax
import jax.numpy as jnp
import numpy as np
from jax import lax
from jax.experimental import pallas as pl

# ---- problem sizes (small, consistent with the module) ----
S = 8          # sequence length
B = 2          # batch
D = 32         # d_model
NHEAD = 4
HD = D // NHEAD
FF = 64        # dim_feedforward
EPS = 1e-5
N = S * B      # rows of the folded (batch-in-rows) slab
NEG = -1e30    # additive mask for cross-batch score entries


def _encoder_layer_kernel(x_ref, pos_ref,
                          wqk_ref, bqk_ref, wv_ref, bv_ref,
                          wo_ref, bo_ref,
                          w1_ref, b1_ref, w2_ref, b2_ref,
                          g1_ref, be1_ref, g2_ref, be2_ref,
                          o_ref):
    # Full (N, D) slab; rows interleave batches (batch id = row % B).
    x = x_ref[...].astype(jnp.float32)
    pos = pos_ref[...].astype(jnp.float32)

    qk_in = x + pos                            # q = k = src + pos ; value = src

    # ---- fused Q/K projection + V projection (weights pre-transposed: y = x @ W^T + b) ----
    qk = jnp.dot(qk_in, wqk_ref[...], preferred_element_type=jnp.float32) + bqk_ref[...]
    q = qk[:, :D] * (1.0 / math.sqrt(HD))      # fold attention scale into q
    k = qk[:, D:]
    v = jnp.dot(x, wv_ref[...], preferred_element_type=jnp.float32) + bv_ref[...]

    # ---- cross-batch additive mask: row/col of the (N, N) score slab belong to batch idx % B ----
    row_b = lax.broadcasted_iota(jnp.int32, (N, N), 0) % B
    col_b = lax.broadcasted_iota(jnp.int32, (N, N), 1) % B
    bias = jnp.where(row_b == col_b, 0.0, NEG).astype(jnp.float32)

    # ---- multi-head attention; output projection folded into the head loop ----
    attn_acc = jnp.zeros((N, D), jnp.float32)
    for h in range(NHEAD):
        sl = slice(h * HD, (h + 1) * HD)
        qh = q[:, sl]                          # (N, HD) lane slices
        kh = k[:, sl]
        vh = v[:, sl]
        # scores = qh @ kh^T without materializing a transpose
        scores = lax.dot_general(qh, kh, (((1,), (1,)), ((), ())),
                                 preferred_element_type=jnp.float32) + bias
        m = jnp.max(scores, axis=-1, keepdims=True)
        p = jnp.exp(scores - m)
        denom = jnp.sum(p, axis=-1, keepdims=True)
        p = p * pl.reciprocal(denom, approx=True)
        ctx_h = jnp.dot(p, vh, preferred_element_type=jnp.float32)          # (N, HD)
        attn_acc = attn_acc + jnp.dot(ctx_h, wo_ref[sl, :],                 # sublane slice of W_O^T
                                      preferred_element_type=jnp.float32)

    # ---- residual + LayerNorm1 ----
    x1 = x + attn_acc + bo_ref[...]
    mu1 = jnp.mean(x1, axis=-1, keepdims=True)
    xc1 = x1 - mu1
    var1 = jnp.mean(xc1 * xc1, axis=-1, keepdims=True)
    x1 = xc1 * lax.rsqrt(var1 + EPS) * g1_ref[...] + be1_ref[...]

    # ---- feed-forward (ReLU activation; dropout = identity in eval mode) ----
    h1 = jnp.dot(x1, w1_ref[...], preferred_element_type=jnp.float32) + b1_ref[...]
    h1 = jnp.maximum(h1, 0.0)
    ffn = jnp.dot(h1, w2_ref[...], preferred_element_type=jnp.float32) + b2_ref[...]

    # ---- residual + LayerNorm2 ----
    x2 = x1 + ffn
    mu2 = jnp.mean(x2, axis=-1, keepdims=True)
    xc2 = x2 - mu2
    var2 = jnp.mean(xc2 * xc2, axis=-1, keepdims=True)
    out = xc2 * lax.rsqrt(var2 + EPS) * g2_ref[...] + be2_ref[...]

    o_ref[...] = out.astype(o_ref.dtype)       # single dense (N, D) store


@jax.jit
def transformer_encoder_layer(src, pos, params):
    """src, pos: (S, B, D) float32 (PyTorch seq-first layout). Returns (S, B, D)."""
    # Free reshapes (no data movement): rows interleave batches, batch = row % B.
    x2d = src.reshape(N, D)
    p2d = pos.reshape(N, D)

    weight_args = (
        params["wqk_t"], params["bqk"], params["wv_t"], params["bv"],
        params["wo_t"], params["bo"],
        params["w1_t"], params["b1"], params["w2_t"], params["b2"],
        params["ln1_g"], params["ln1_b"], params["ln2_g"], params["ln2_b"],
    )

    # Single invocation, no grid: every operand is a whole-array VMEM block.
    out = pl.pallas_call(
        _encoder_layer_kernel,
        out_shape=jax.ShapeDtypeStruct((N, D), src.dtype),
    )(x2d, p2d, *weight_args)

    return out.reshape(S, B, D)


def _make_params(key):
    ks = jax.random.split(key, 12)
    s = 0.05
    in_proj_w = jax.random.normal(ks[0], (3 * D, D), jnp.float32) * s   # PyTorch (3D, D)
    in_proj_b = jax.random.normal(ks[1], (3 * D,), jnp.float32) * s
    wo = jax.random.normal(ks[2], (D, D), jnp.float32) * s              # out_proj (D, D)
    bo = jax.random.normal(ks[3], (D,), jnp.float32) * s
    w1 = jax.random.normal(ks[4], (FF, D), jnp.float32) * s             # linear1 (FF, D)
    b1 = jax.random.normal(ks[5], (FF,), jnp.float32) * s
    w2 = jax.random.normal(ks[6], (D, FF), jnp.float32) * s             # linear2 (D, FF)
    b2 = jax.random.normal(ks[7], (D,), jnp.float32) * s
    g1 = 1.0 + jax.random.normal(ks[8], (D,), jnp.float32) * s
    be1 = jax.random.normal(ks[9], (D,), jnp.float32) * s
    g2 = 1.0 + jax.random.normal(ks[10], (D,), jnp.float32) * s
    be2 = jax.random.normal(ks[11], (D,), jnp.float32) * s

    wq, wk, wv = in_proj_w[:D], in_proj_w[D:2 * D], in_proj_w[2 * D:]
    bq, bk, bv = in_proj_b[:D], in_proj_b[D:2 * D], in_proj_b[2 * D:]

    # Pre-transpose so the kernel computes y = x @ W_t + b (matches x @ W^T + b).
    # Q and K projections are fused into one (D, 2D) weight.
    return dict(
        wqk_t=jnp.concatenate([wq.T, wk.T], axis=1),        # (D, 2D)
        bqk=jnp.concatenate([bq, bk]).reshape(1, 2 * D),
        wv_t=wv.T, bv=bv.reshape(1, D),
        wo_t=wo.T, bo=bo.reshape(1, D),
        w1_t=w1.T, b1=b1.reshape(1, FF),
        w2_t=w2.T, b2=b2.reshape(1, D),
        ln1_g=g1.reshape(1, D), ln1_b=be1.reshape(1, D),
        ln2_g=g2.reshape(1, D), ln2_b=be2.reshape(1, D),
    )


def _reference(src, pos, prm):
    """Pure-JAX reference of the same forward (eval mode)."""
    wq_t, wk_t = prm["wqk_t"][:, :D], prm["wqk_t"][:, D:]
    bq, bk = prm["bqk"][:, :D], prm["bqk"][:, D:]

    x = jnp.transpose(src, (1, 0, 2))   # (B, S, D)
    p = jnp.transpose(pos, (1, 0, 2))
    qk = x + p
    q = qk @ wq_t + bq
    k = qk @ wk_t + bk
    v = x @ prm["wv_t"] + prm["bv"]

    def heads(t):
        return t.reshape(B, S, NHEAD, HD).transpose(0, 2, 1, 3)  # (B, H, S, HD)

    qh, kh, vh = heads(q), heads(k), heads(v)
    scores = jnp.einsum("bhsd,bhtd->bhst", qh, kh) / math.sqrt(HD)
    attn = jax.nn.softmax(scores, axis=-1)
    ctx = jnp.einsum("bhst,bhtd->bhsd", attn, vh).transpose(0, 2, 1, 3).reshape(B, S, D)
    attn_out = ctx @ prm["wo_t"] + prm["bo"]

    def ln(t, g, b):
        mu = t.mean(-1, keepdims=True)
        var = ((t - mu) ** 2).mean(-1, keepdims=True)
        return (t - mu) * jax.lax.rsqrt(var + EPS) * g + b

    x1 = ln(x + attn_out, prm["ln1_g"], prm["ln1_b"])
    ffn = jnp.maximum(x1 @ prm["w1_t"] + prm["b1"], 0.0) @ prm["w2_t"] + prm["b2"]
    x2 = ln(x1 + ffn, prm["ln2_g"], prm["ln2_b"])
    return x2.transpose(1, 0, 2)  # (S, B, D)


if __name__ == "__main__":
    key = jax.random.PRNGKey(0)
    k_src, k_pos, k_prm = jax.random.split(key, 3)
    src = jax.random.normal(k_src, (S, B, D), jnp.float32)
    pos = jax.random.normal(k_pos, (S, B, D), jnp.float32)
    params = _make_params(k_prm)

    out = transformer_encoder_layer(src, pos, params)
    out = jax.block_until_ready(out)

    ref = jax.block_until_ready(_reference(src, pos, params))
    np.testing.assert_allclose(np.asarray(out), np.asarray(ref), rtol=2e-3, atol=2e-3)

    print("KERNEL_OK")
</pallas_src>

<mosaic_0001>
module attributes {stable_mosaic.version = 11 : i64} {
  func.func @_encoder_layer_kernel(%arg0: memref<16x32xf32, #tpu.memory_space<vmem>>, %arg1: memref<16x32xf32, #tpu.memory_space<vmem>>, %arg2: memref<32x64xf32, #tpu.memory_space<vmem>>, %arg3: memref<1x64xf32, #tpu.memory_space<vmem>>, %arg4: memref<32x32xf32, #tpu.memory_space<vmem>>, %arg5: memref<1x32xf32, #tpu.memory_space<vmem>>, %arg6: memref<32x32xf32, #tpu.memory_space<vmem>>, %arg7: memref<1x32xf32, #tpu.memory_space<vmem>>, %arg8: memref<32x64xf32, #tpu.memory_space<vmem>>, %arg9: memref<1x64xf32, #tpu.memory_space<vmem>>, %arg10: memref<64x32xf32, #tpu.memory_space<vmem>>, %arg11: memref<1x32xf32, #tpu.memory_space<vmem>>, %arg12: memref<1x32xf32, #tpu.memory_space<vmem>>, %arg13: memref<1x32xf32, #tpu.memory_space<vmem>>, %arg14: memref<1x32xf32, #tpu.memory_space<vmem>>, %arg15: memref<1x32xf32, #tpu.memory_space<vmem>>, %arg16: memref<16x32xf32, #tpu.memory_space<vmem>>) attributes {dimension_semantics = [], scalar_prefetch = 0 : i64, scratch_operands = 0 : i64, tpu.core_type = #tpu.core_type<tc>} {
    %c0 = arith.constant 0 : index
    %c0_0 = arith.constant 0 : index
    %0 = vector.load %arg0[%c0, %c0_0] : memref<16x32xf32, #tpu.memory_space<vmem>>, vector<16x32xf32>
    %c0_1 = arith.constant 0 : index
    %c0_2 = arith.constant 0 : index
    %1 = vector.load %arg1[%c0_1, %c0_2] : memref<16x32xf32, #tpu.memory_space<vmem>>, vector<16x32xf32>
    %2 = arith.addf %0, %1 : vector<16x32xf32>
    %c0_3 = arith.constant 0 : index
    %c0_4 = arith.constant 0 : index
    %3 = vector.load %arg2[%c0_3, %c0_4] : memref<32x64xf32, #tpu.memory_space<vmem>>, vector<32x64xf32>
    %cst = arith.constant dense<0.000000e+00> : vector<16x64xf32>
    %4 = tpu.matmul %2, %3, %cst {dimension_numbers = #tpu.dot_dimension_numbers<[1], [0], [0], [1], [0, 0, 1, 1], [], []>} : vector<16x32xf32>, vector<32x64xf32>, vector<16x64xf32> -> vector<16x64xf32>
    %c0_5 = arith.constant 0 : index
    %c0_6 = arith.constant 0 : index
    %5 = vector.load %arg3[%c0_5, %c0_6] : memref<1x64xf32, #tpu.memory_space<vmem>>, vector<1x64xf32>
    %6 = vector.broadcast %5 : vector<1x64xf32> to vector<16x64xf32>
    %7 = arith.addf %4, %6 : vector<16x64xf32>
    %8 = vector.extract_strided_slice %7 {offsets = [0, 0], sizes = [16, 32], strides = [1, 1]} : vector<16x64xf32> to vector<16x32xf32>
    %cst_7 = arith.constant 0.353553385 : f32
    %9 = vector.broadcast %cst_7 : f32 to vector<16x32xf32>
    %10 = arith.mulf %8, %9 : vector<16x32xf32>
    %11 = vector.extract_strided_slice %7 {offsets = [0, 32], sizes = [16, 32], strides = [1, 1]} : vector<16x64xf32> to vector<16x32xf32>
    %c0_8 = arith.constant 0 : index
    %c0_9 = arith.constant 0 : index
    %12 = vector.load %arg4[%c0_8, %c0_9] : memref<32x32xf32, #tpu.memory_space<vmem>>, vector<32x32xf32>
    %cst_10 = arith.constant dense<0.000000e+00> : vector<16x32xf32>
    %13 = tpu.matmul %0, %12, %cst_10 {dimension_numbers = #tpu.dot_dimension_numbers<[1], [0], [0], [1], [0, 0, 1, 1], [], []>} : vector<16x32xf32>, vector<32x32xf32>, vector<16x32xf32> -> vector<16x32xf32>
    %c0_11 = arith.constant 0 : index
    %c0_12 = arith.constant 0 : index
    %14 = vector.load %arg5[%c0_11, %c0_12] : memref<1x32xf32, #tpu.memory_space<vmem>>, vector<1x32xf32>
    %15 = vector.broadcast %14 : vector<1x32xf32> to vector<16x32xf32>
    %16 = arith.addf %13, %15 : vector<16x32xf32>
    %17 = tpu.iota {dimensions = array<i32: 0>} : vector<16x16xi32>
    %c2_i32 = arith.constant 2 : i32
    %c0_i32 = arith.constant 0 : i32
    %18 = arith.cmpi eq, %c2_i32, %c0_i32 : i32
    %c1_i32 = arith.constant 1 : i32
    %19 = arith.select %18, %c1_i32, %c2_i32 : i32
    %20 = vector.broadcast %19 : i32 to vector<16x16xi32>
    %21 = arith.remsi %17, %20 : vector<16x16xi32>
    %c0_i32_13 = arith.constant 0 : i32
    %22 = vector.broadcast %c0_i32_13 : i32 to vector<16x16xi32>
    %23 = arith.cmpi ne, %21, %22 : vector<16x16xi32>
    %c0_i32_14 = arith.constant 0 : i32
    %24 = vector.broadcast %c0_i32_14 : i32 to vector<16x16xi32>
    %25 = arith.cmpi slt, %21, %24 : vector<16x16xi32>
    %c0_i32_15 = arith.constant 0 : i32
    %26 = arith.cmpi slt, %19, %c0_i32_15 : i32
    %27 = vector.broadcast %26 : i1 to vector<16x16xi1>
    %28 = vector.broadcast %27 : vector<16x16xi1> to vector<16x16xi1>
    %29 = arith.xori %25, %28 : vector<16x16xi1>
    %30 = arith.andi %29, %23 : vector<16x16xi1>
    %31 = vector.broadcast %19 : i32 to vector<16x16xi32>
    %32 = arith.addi %21, %31 : vector<16x16xi32>
    %33 = arith.select %30, %32, %21 : vector<16x16xi1>, vector<16x16xi32>
    %34 = tpu.iota {dimensions = array<i32: 1>} : vector<16x16xi32>
    %c2_i32_16 = arith.constant 2 : i32
    %c0_i32_17 = arith.constant 0 : i32
    %35 = arith.cmpi eq, %c2_i32_16, %c0_i32_17 : i32
    %c1_i32_18 = arith.constant 1 : i32
    %36 = arith.select %35, %c1_i32_18, %c2_i32_16 : i32
    %37 = vector.broadcast %36 : i32 to vector<16x16xi32>
    %38 = arith.remsi %34, %37 : vector<16x16xi32>
    %c0_i32_19 = arith.constant 0 : i32
    %39 = vector.broadcast %c0_i32_19 : i32 to vector<16x16xi32>
    %40 = arith.cmpi ne, %38, %39 : vector<16x16xi32>
    %c0_i32_20 = arith.constant 0 : i32
    %41 = vector.broadcast %c0_i32_20 : i32 to vector<16x16xi32>
    %42 = arith.cmpi slt, %38, %41 : vector<16x16xi32>
    %c0_i32_21 = arith.constant 0 : i32
    %43 = arith.cmpi slt, %36, %c0_i32_21 : i32
    %44 = vector.broadcast %43 : i1 to vector<16x16xi1>
    %45 = vector.broadcast %44 : vector<16x16xi1> to vector<16x16xi1>
    %46 = arith.xori %42, %45 : vector<16x16xi1>
    %47 = arith.andi %46, %40 : vector<16x16xi1>
    %48 = vector.broadcast %36 : i32 to vector<16x16xi32>
    %49 = arith.addi %38, %48 : vector<16x16xi32>
    %50 = arith.select %47, %49, %38 : vector<16x16xi1>, vector<16x16xi32>
    %51 = arith.cmpi eq, %33, %50 : vector<16x16xi32>
    %cst_22 = arith.constant 0.000000e+00 : f32
    %cst_23 = arith.constant -1.000000e+30 : f32
    %52 = vector.broadcast %cst_22 : f32 to vector<16x16xf32>
    %53 = vector.broadcast %cst_23 : f32 to vector<16x16xf32>
    %54 = arith.select %51, %52, %53 : vector<16x16xi1>, vector<16x16xf32>
    %cst_24 = arith.constant 0.000000e+00 : f32
    %55 = vector.broadcast %cst_24 : f32 to vector<16x32xf32>
    %56 = vector.extract_strided_slice %10 {offsets = [0, 0], sizes = [16, 8], strides = [1, 1]} : vector<16x32xf32> to vector<16x8xf32>
    %57 = vector.extract_strided_slice %11 {offsets = [0, 0], sizes = [16, 8], strides = [1, 1]} : vector<16x32xf32> to vector<16x8xf32>
    %58 = vector.extract_strided_slice %16 {offsets = [0, 0], sizes = [16, 8], strides = [1, 1]} : vector<16x32xf32> to vector<16x8xf32>
    %cst_25 = arith.constant dense<0.000000e+00> : vector<16x16xf32>
    %59 = tpu.matmul %56, %57, %cst_25 {dimension_numbers = #tpu.dot_dimension_numbers<[1], [1], [0], [0], [0, 0, 1, 0], [], []>} : vector<16x8xf32>, vector<16x8xf32>, vector<16x16xf32> -> vector<16x16xf32>
    %60 = arith.addf %59, %54 : vector<16x16xf32>
    %cst_26 = arith.constant dense<0xFF800000> : vector<16xf32>
    %61 = vector.multi_reduction <maximumf>, %60, %cst_26 [1] : vector<16x16xf32> to vector<16xf32>
    %62 = vector.shape_cast %61 : vector<16xf32> to vector<16x1xf32>
    %63 = vector.broadcast %62 : vector<16x1xf32> to vector<16x16xf32>
    %64 = arith.subf %60, %63 : vector<16x16xf32>
    %65 = math.exp %64 : vector<16x16xf32>
    %cst_27 = arith.constant dense<0.000000e+00> : vector<16xf32>
    %66 = vector.multi_reduction <add>, %65, %cst_27 [1] : vector<16x16xf32> to vector<16xf32>
    %67 = vector.shape_cast %66 : vector<16xf32> to vector<16x1xf32>
    %68 = tpu.reciprocal %67 {approx = true} : vector<16x1xf32> -> vector<16x1xf32>
    %69 = vector.broadcast %68 : vector<16x1xf32> to vector<16x16xf32>
    %70 = arith.mulf %65, %69 : vector<16x16xf32>
    %cst_28 = arith.constant dense<0.000000e+00> : vector<16x8xf32>
    %71 = tpu.matmul %70, %58, %cst_28 {dimension_numbers = #tpu.dot_dimension_numbers<[1], [0], [0], [1], [0, 0, 1, 1], [], []>} : vector<16x16xf32>, vector<16x8xf32>, vector<16x8xf32> -> vector<16x8xf32>
    %c0_29 = arith.constant 0 : index
    %c0_30 = arith.constant 0 : index
    %72 = vector.load %arg6[%c0_29, %c0_30] : memref<32x32xf32, #tpu.memory_space<vmem>>, vector<8x32xf32>
    %cst_31 = arith.constant dense<0.000000e+00> : vector<16x32xf32>
    %73 = tpu.matmul %71, %72, %cst_31 {dimension_numbers = #tpu.dot_dimension_numbers<[1], [0], [0], [1], [0, 0, 1, 1], [], []>} : vector<16x8xf32>, vector<8x32xf32>, vector<16x32xf32> -> vector<16x32xf32>
    %74 = arith.addf %55, %73 : vector<16x32xf32>
    %75 = vector.extract_strided_slice %10 {offsets = [0, 8], sizes = [16, 8], strides = [1, 1]} : vector<16x32xf32> to vector<16x8xf32>
    %76 = vector.extract_strided_slice %11 {offsets = [0, 8], sizes = [16, 8], strides = [1, 1]} : vector<16x32xf32> to vector<16x8xf32>
    %77 = vector.extract_strided_slice %16 {offsets = [0, 8], sizes = [16, 8], strides = [1, 1]} : vector<16x32xf32> to vector<16x8xf32>
    %cst_32 = arith.constant dense<0.000000e+00> : vector<16x16xf32>
    %78 = tpu.matmul %75, %76, %cst_32 {dimension_numbers = #tpu.dot_dimension_numbers<[1], [1], [0], [0], [0, 0, 1, 0], [], []>} : vector<16x8xf32>, vector<16x8xf32>, vector<16x16xf32> -> vector<16x16xf32>
    %79 = arith.addf %78, %54 : vector<16x16xf32>
    %cst_33 = arith.constant dense<0xFF800000> : vector<16xf32>
    %80 = vector.multi_reduction <maximumf>, %79, %cst_33 [1] : vector<16x16xf32> to vector<16xf32>
    %81 = vector.shape_cast %80 : vector<16xf32> to vector<16x1xf32>
    %82 = vector.broadcast %81 : vector<16x1xf32> to vector<16x16xf32>
    %83 = arith.subf %79, %82 : vector<16x16xf32>
    %84 = math.exp %83 : vector<16x16xf32>
    %cst_34 = arith.constant dense<0.000000e+00> : vector<16xf32>
    %85 = vector.multi_reduction <add>, %84, %cst_34 [1] : vector<16x16xf32> to vector<16xf32>
    %86 = vector.shape_cast %85 : vector<16xf32> to vector<16x1xf32>
    %87 = tpu.reciprocal %86 {approx = true} : vector<16x1xf32> -> vector<16x1xf32>
    %88 = vector.broadcast %87 : vector<16x1xf32> to vector<16x16xf32>
    %89 = arith.mulf %84, %88 : vector<16x16xf32>
    %cst_35 = arith.constant dense<0.000000e+00> : vector<16x8xf32>
    %90 = tpu.matmul %89, %77, %cst_35 {dimension_numbers = #tpu.dot_dimension_numbers<[1], [0], [0], [1], [0, 0, 1, 1], [], []>} : vector<16x16xf32>, vector<16x8xf32>, vector<16x8xf32> -> vector<16x8xf32>
    %c8 = arith.constant 8 : index
    %c0_36 = arith.constant 0 : index
    %91 = vector.load %arg6[%c8, %c0_36] : memref<32x32xf32, #tpu.memory_space<vmem>>, vector<8x32xf32>
    %cst_37 = arith.constant dense<0.000000e+00> : vector<16x32xf32>
    %92 = tpu.matmul %90, %91, %cst_37 {dimension_numbers = #tpu.dot_dimension_numbers<[1], [0], [0], [1], [0, 0, 1, 1], [], []>} : vector<16x8xf32>, vector<8x32xf32>, vector<16x32xf32> -> vector<16x32xf32>
    %93 = arith.addf %74, %92 : vector<16x32xf32>
    %94 = vector.extract_strided_slice %10 {offsets = [0, 16], sizes = [16, 8], strides = [1, 1]} : vector<16x32xf32> to vector<16x8xf32>
    %95 = vector.extract_strided_slice %11 {offsets = [0, 16], sizes = [16, 8], strides = [1, 1]} : vector<16x32xf32> to vector<16x8xf32>
    %96 = vector.extract_strided_slice %16 {offsets = [0, 16], sizes = [16, 8], strides = [1, 1]} : vector<16x32xf32> to vector<16x8xf32>
    %cst_38 = arith.constant dense<0.000000e+00> : vector<16x16xf32>
    %97 = tpu.matmul %94, %95, %cst_38 {dimension_numbers = #tpu.dot_dimension_numbers<[1], [1], [0], [0], [0, 0, 1, 0], [], []>} : vector<16x8xf32>, vector<16x8xf32>, vector<16x16xf32> -> vector<16x16xf32>
    %98 = arith.addf %97, %54 : vector<16x16xf32>
    %cst_39 = arith.constant dense<0xFF800000> : vector<16xf32>
    %99 = vector.multi_reduction <maximumf>, %98, %cst_39 [1] : vector<16x16xf32> to vector<16xf32>
    %100 = vector.shape_cast %99 : vector<16xf32> to vector<16x1xf32>
    %101 = vector.broadcast %100 : vector<16x1xf32> to vector<16x16xf32>
    %102 = arith.subf %98, %101 : vector<16x16xf32>
    %103 = math.exp %102 : vector<16x16xf32>
    %cst_40 = arith.constant dense<0.000000e+00> : vector<16xf32>
    %104 = vector.multi_reduction <add>, %103, %cst_40 [1] : vector<16x16xf32> to vector<16xf32>
    %105 = vector.shape_cast %104 : vector<16xf32> to vector<16x1xf32>
    %106 = tpu.reciprocal %105 {approx = true} : vector<16x1xf32> -> vector<16x1xf32>
    %107 = vector.broadcast %106 : vector<16x1xf32> to vector<16x16xf32>
    %108 = arith.mulf %103, %107 : vector<16x16xf32>
    %cst_41 = arith.constant dense<0.000000e+00> : vector<16x8xf32>
    %109 = tpu.matmul %108, %96, %cst_41 {dimension_numbers = #tpu.dot_dimension_numbers<[1], [0], [0], [1], [0, 0, 1, 1], [], []>} : vector<16x16xf32>, vector<16x8xf32>, vector<16x8xf32> -> vector<16x8xf32>
    %c16 = arith.constant 16 : index
    %c0_42 = arith.constant 0 : index
    %110 = vector.load %arg6[%c16, %c0_42] : memref<32x32xf32, #tpu.memory_space<vmem>>, vector<8x32xf32>
    %cst_43 = arith.constant dense<0.000000e+00> : vector<16x32xf32>
    %111 = tpu.matmul %109, %110, %cst_43 {dimension_numbers = #tpu.dot_dimension_numbers<[1], [0], [0], [1], [0, 0, 1, 1], [], []>} : vector<16x8xf32>, vector<8x32xf32>, vector<16x32xf32> -> vector<16x32xf32>
    %112 = arith.addf %93, %111 : vector<16x32xf32>
    %113 = vector.extract_strided_slice %10 {offsets = [0, 24], sizes = [16, 8], strides = [1, 1]} : vector<16x32xf32> to vector<16x8xf32>
    %114 = vector.extract_strided_slice %11 {offsets = [0, 24], sizes = [16, 8], strides = [1, 1]} : vector<16x32xf32> to vector<16x8xf32>
    %115 = vector.extract_strided_slice %16 {offsets = [0, 24], sizes = [16, 8], strides = [1, 1]} : vector<16x32xf32> to vector<16x8xf32>
    %cst_44 = arith.constant dense<0.000000e+00> : vector<16x16xf32>
    %116 = tpu.matmul %113, %114, %cst_44 {dimension_numbers = #tpu.dot_dimension_numbers<[1], [1], [0], [0], [0, 0, 1, 0], [], []>} : vector<16x8xf32>, vector<16x8xf32>, vector<16x16xf32> -> vector<16x16xf32>
    %117 = arith.addf %116, %54 : vector<16x16xf32>
    %cst_45 = arith.constant dense<0xFF800000> : vector<16xf32>
    %118 = vector.multi_reduction <maximumf>, %117, %cst_45 [1] : vector<16x16xf32> to vector<16xf32>
    %119 = vector.shape_cast %118 : vector<16xf32> to vector<16x1xf32>
    %120 = vector.broadcast %119 : vector<16x1xf32> to vector<16x16xf32>
    %121 = arith.subf %117, %120 : vector<16x16xf32>
    %122 = math.exp %121 : vector<16x16xf32>
    %cst_46 = arith.constant dense<0.000000e+00> : vector<16xf32>
    %123 = vector.multi_reduction <add>, %122, %cst_46 [1] : vector<16x16xf32> to vector<16xf32>
    %124 = vector.shape_cast %123 : vector<16xf32> to vector<16x1xf32>
    %125 = tpu.reciprocal %124 {approx = true} : vector<16x1xf32> -> vector<16x1xf32>
    %126 = vector.broadcast %125 : vector<16x1xf32> to vector<16x16xf32>
    %127 = arith.mulf %122, %126 : vector<16x16xf32>
    %cst_47 = arith.constant dense<0.000000e+00> : vector<16x8xf32>
    %128 = tpu.matmul %127, %115, %cst_47 {dimension_numbers = #tpu.dot_dimension_numbers<[1], [0], [0], [1], [0, 0, 1, 1], [], []>} : vector<16x16xf32>, vector<16x8xf32>, vector<16x8xf32> -> vector<16x8xf32>
    %c24 = arith.constant 24 : index
    %c0_48 = arith.constant 0 : index
    %129 = vector.load %arg6[%c24, %c0_48] : memref<32x32xf32, #tpu.memory_space<vmem>>, vector<8x32xf32>
    %cst_49 = arith.constant dense<0.000000e+00> : vector<16x32xf32>
    %130 = tpu.matmul %128, %129, %cst_49 {dimension_numbers = #tpu.dot_dimension_numbers<[1], [0], [0], [1], [0, 0, 1, 1], [], []>} : vector<16x8xf32>, vector<8x32xf32>, vector<16x32xf32> -> vector<16x32xf32>
    %131 = arith.addf %112, %130 : vector<16x32xf32>
    %132 = arith.addf %0, %131 : vector<16x32xf32>
    %c0_50 = arith.constant 0 : index
    %c0_51 = arith.constant 0 : index
    %133 = vector.load %arg7[%c0_50, %c0_51] : memref<1x32xf32, #tpu.memory_space<vmem>>, vector<1x32xf32>
    %134 = vector.broadcast %133 : vector<1x32xf32> to vector<16x32xf32>
    %135 = arith.addf %132, %134 : vector<16x32xf32>
    %cst_52 = arith.constant dense<0.000000e+00> : vector<16xf32>
    %136 = vector.multi_reduction <add>, %135, %cst_52 [1] : vector<16x32xf32> to vector<16xf32>
    %137 = vector.shape_cast %136 : vector<16xf32> to vector<16x1xf32>
    %cst_53 = arith.constant 3.200000e+01 : f32
    %138 = vector.broadcast %cst_53 : f32 to vector<16x1xf32>
    %139 = arith.divf %137, %138 : vector<16x1xf32>
    %140 = vector.broadcast %139 : vector<16x1xf32> to vector<16x32xf32>
    %141 = arith.subf %135, %140 : vector<16x32xf32>
    %142 = arith.mulf %141, %141 : vector<16x32xf32>
    %cst_54 = arith.constant dense<0.000000e+00> : vector<16xf32>
    %143 = vector.multi_reduction <add>, %142, %cst_54 [1] : vector<16x32xf32> to vector<16xf32>
    %144 = vector.shape_cast %143 : vector<16xf32> to vector<16x1xf32>
    %cst_55 = arith.constant 3.200000e+01 : f32
    %145 = vector.broadcast %cst_55 : f32 to vector<16x1xf32>
    %146 = arith.divf %144, %145 : vector<16x1xf32>
    %cst_56 = arith.constant 9.99999974E-6 : f32
    %147 = vector.broadcast %cst_56 : f32 to vector<16x1xf32>
    %148 = arith.addf %146, %147 : vector<16x1xf32>
    %149 = math.rsqrt %148 : vector<16x1xf32>
    %150 = vector.broadcast %149 : vector<16x1xf32> to vector<16x32xf32>
    %151 = arith.mulf %141, %150 : vector<16x32xf32>
    %c0_57 = arith.constant 0 : index
    %c0_58 = arith.constant 0 : index
    %152 = vector.load %arg12[%c0_57, %c0_58] : memref<1x32xf32, #tpu.memory_space<vmem>>, vector<1x32xf32>
    %153 = vector.broadcast %152 : vector<1x32xf32> to vector<16x32xf32>
    %154 = arith.mulf %151, %153 : vector<16x32xf32>
    %c0_59 = arith.constant 0 : index
    %c0_60 = arith.constant 0 : index
    %155 = vector.load %arg13[%c0_59, %c0_60] : memref<1x32xf32, #tpu.memory_space<vmem>>, vector<1x32xf32>
    %156 = vector.broadcast %155 : vector<1x32xf32> to vector<16x32xf32>
    %157 = arith.addf %154, %156 : vector<16x32xf32>
    %c0_61 = arith.constant 0 : index
    %c0_62 = arith.constant 0 : index
    %158 = vector.load %arg8[%c0_61, %c0_62] : memref<32x64xf32, #tpu.memory_space<vmem>>, vector<32x64xf32>
    %cst_63 = arith.constant dense<0.000000e+00> : vector<16x64xf32>
    %159 = tpu.matmul %157, %158, %cst_63 {dimension_numbers = #tpu.dot_dimension_numbers<[1], [0], [0], [1], [0, 0, 1, 1], [], []>} : vector<16x32xf32>, vector<32x64xf32>, vector<16x64xf32> -> vector<16x64xf32>
    %c0_64 = arith.constant 0 : index
    %c0_65 = arith.constant 0 : index
    %160 = vector.load %arg9[%c0_64, %c0_65] : memref<1x64xf32, #tpu.memory_space<vmem>>, vector<1x64xf32>
    %161 = vector.broadcast %160 : vector<1x64xf32> to vector<16x64xf32>
    %162 = arith.addf %159, %161 : vector<16x64xf32>
    %cst_66 = arith.constant 0.000000e+00 : f32
    %163 = vector.broadcast %cst_66 : f32 to vector<16x64xf32>
    %164 = arith.maximumf %162, %163 : vector<16x64xf32>
    %c0_67 = arith.constant 0 : index
    %c0_68 = arith.constant 0 : index
    %165 = vector.load %arg10[%c0_67, %c0_68] : memref<64x32xf32, #tpu.memory_space<vmem>>, vector<64x32xf32>
    %cst_69 = arith.constant dense<0.000000e+00> : vector<16x32xf32>
    %166 = tpu.matmul %164, %165, %cst_69 {dimension_numbers = #tpu.dot_dimension_numbers<[1], [0], [0], [1], [0, 0, 1, 1], [], []>} : vector<16x64xf32>, vector<64x32xf32>, vector<16x32xf32> -> vector<16x32xf32>
    %c0_70 = arith.constant 0 : index
    %c0_71 = arith.constant 0 : index
    %167 = vector.load %arg11[%c0_70, %c0_71] : memref<1x32xf32, #tpu.memory_space<vmem>>, vector<1x32xf32>
    %168 = vector.broadcast %167 : vector<1x32xf32> to vector<16x32xf32>
    %169 = arith.addf %166, %168 : vector<16x32xf32>
    %170 = arith.addf %157, %169 : vector<16x32xf32>
    %cst_72 = arith.constant dense<0.000000e+00> : vector<16xf32>
    %171 = vector.multi_reduction <add>, %170, %cst_72 [1] : vector<16x32xf32> to vector<16xf32>
    %172 = vector.shape_cast %171 : vector<16xf32> to vector<16x1xf32>
    %cst_73 = arith.constant 3.200000e+01 : f32
    %173 = vector.broadcast %cst_73 : f32 to vector<16x1xf32>
    %174 = arith.divf %172, %173 : vector<16x1xf32>
    %175 = vector.broadcast %174 : vector<16x1xf32> to vector<16x32xf32>
    %176 = arith.subf %170, %175 : vector<16x32xf32>
    %177 = arith.mulf %176, %176 : vector<16x32xf32>
    %cst_74 = arith.constant dense<0.000000e+00> : vector<16xf32>
    %178 = vector.multi_reduction <add>, %177, %cst_74 [1] : vector<16x32xf32> to vector<16xf32>
    %179 = vector.shape_cast %178 : vector<16xf32> to vector<16x1xf32>
    %cst_75 = arith.constant 3.200000e+01 : f32
    %180 = vector.broadcast %cst_75 : f32 to vector<16x1xf32>
    %181 = arith.divf %179, %180 : vector<16x1xf32>
    %cst_76 = arith.constant 9.99999974E-6 : f32
    %182 = vector.broadcast %cst_76 : f32 to vector<16x1xf32>
    %183 = arith.addf %181, %182 : vector<16x1xf32>
    %184 = math.rsqrt %183 : vector<16x1xf32>
    %185 = vector.broadcast %184 : vector<16x1xf32> to vector<16x32xf32>
    %186 = arith.mulf %176, %185 : vector<16x32xf32>
    %c0_77 = arith.constant 0 : index
    %c0_78 = arith.constant 0 : index
    %187 = vector.load %arg14[%c0_77, %c0_78] : memref<1x32xf32, #tpu.memory_space<vmem>>, vector<1x32xf32>
    %188 = vector.broadcast %187 : vector<1x32xf32> to vector<16x32xf32>
    %189 = arith.mulf %186, %188 : vector<16x32xf32>
    %c0_79 = arith.constant 0 : index
    %c0_80 = arith.constant 0 : index
    %190 = vector.load %arg15[%c0_79, %c0_80] : memref<1x32xf32, #tpu.memory_space<vmem>>, vector<1x32xf32>
    %191 = vector.broadcast %190 : vector<1x32xf32> to vector<16x32xf32>
    %192 = arith.addf %189, %191 : vector<16x32xf32>
    %c0_81 = arith.constant 0 : index
    %c0_82 = arith.constant 0 : index
    %193 = vector.load %arg16[%c0_81, %c0_82] : memref<16x32xf32, #tpu.memory_space<vmem>>, vector<16x32xf32>
    tpu.vector_store %arg16[%c0_81, %c0_82], %192 {strides = array<i32>} : memref<16x32xf32, #tpu.memory_space<vmem>>, vector<16x32xf32>,
    return
  }
}

</mosaic_0001>

<bundles_post_ra>
// kernel: transformer_encoder_layer.1
= control target key start
LH: loop header
LB: loop body
LE: loop exit
PB: predicated region body
PF: predicated region fallthrough
CT: control target
= control target key end

     0   :  { %s2527_s0 = inlined_call_operand.hbm [shape: f32[16,32], index: 0, kind: input, shape index: {}]   ;;  %s2528_s1 = inlined_call_operand.hbm [shape: f32[16,32], index: 1, kind: input, shape index: {}]   ;;  %s2529_s2 = inlined_call_operand.vmem [shape: f32[32,64], index: 2, kind: input, shape index: {}]   ;;  %s2530_s3 = inlined_call_operand.vmem [shape: f32[1,64], index: 3, kind: input, shape index: {}]   ;;  %s2531_s4 = inlined_call_operand.vmem [shape: f32[32,32], index: 4, kind: input, shape index: {}]   ;;  %s2532_s5 = inlined_call_operand.vmem [shape: f32[1,32], index: 5, kind: input, shape index: {}]   ;;  %s2533_s6 = inlined_call_operand.vmem [shape: f32[32,32], index: 6, kind: input, shape index: {}]   ;;  %s2534_s7 = inlined_call_operand.vmem [shape: f32[1,32], index: 7, kind: input, shape index: {}]   ;;  %s2535_s8 = inlined_call_operand.hbm [shape: f32[32,64], index: 8, kind: input, shape index: {}]   ;;  %s2536_s9 = inlined_call_operand.vmem [shape: f32[1,64], index: 9, kind: input, shape index: {}]   ;;  %s2537_s10 = inlined_call_operand.vmem [shape: f32[64,32], index: 10, kind: input, shape index: {}]   ;;  %s2538_s11 = inlined_call_operand.vmem [shape: f32[1,32], index: 11, kind: input, shape index: {}]   ;;  %s2539_s12 = inlined_call_operand.vmem [shape: f32[1,32], index: 12, kind: input, shape index: {}]   ;;  %s2540_s13 = inlined_call_operand.vmem [shape: f32[1,32], index: 13, kind: input, shape index: {}]   ;;  %s2541_s14 = inlined_call_operand.vmem [shape: f32[1,32], index: 14, kind: input, shape index: {}]   ;;  %s2542_s15 = inlined_call_operand.vmem [shape: f32[1,32], index: 15, kind: input, shape index: {}]   ;;  %s2543_s16 = inlined_call_operand.hbm [shape: f32[16,32], index: 16, kind: output, shape index: {}]  }
   0x1   :  { %2544 = sst [smem:[#allocation12_spill]] %s2527_s0 }
   0x2   :  { %21 = vsyncpa [#allocation3], 0 }
   0x3   :  { %22 = vsyncpa [#allocation6], 0 }
   0x4   :  { %23 = vsyncpa [#allocation4], 0  ;;  %s2165_s21 = smov [#allocation5]   ;;  %s2166_s23 = smov [#allocation2]  }
   0x5   :  { %s41_s22 = sshll.u32 %s2165_s21, 4  ;;  %s29_s24 = sshll.u32 %s2166_s23, 4  ;;  %s42_s22 = int_to_ptr.vmem [resolvable:$true] %s41_s22  ;;  %s30_s24 = int_to_ptr.vmem [resolvable:$true] %s29_s24 }
   0x6   :  { %s2087_s25 = scalar_lea.vmem %s42_s22, 256  ;;  %p2092_p1 = scmp.lt.s32.totalorder %s42_s22, %s42_s22 }
   0x7   :  { %p2088_p0 = scmp.ne.s32.totalorder %s42_s22, %s2087_s25  ;;  %p2093_p2 = scmp.lt.s32.totalorder %s2087_s25, %s2087_s25 }
   0x9   :  { %p2094_p3 = por %p2093_p2, %p2092_p1 }
   0xb   :  { %p2095_p4 = pnand %p2094_p3, %p2088_p0 }
   0xd   :  { %2098 = shalt.err (!%p2095_p4)
}
   0xe   :  { %s2167_s26 = smov 128   ;;  %s2168_s27 = smov 8  }
   0xf   :  { %47 = dma.hbm_to_vmem [thread:$0]  %s2528_s1, 256, %s42_s22, [#allocation6], %s2167_s26, %s2167_s26, %s2168_s27  }
  0x10   :  { %s2107_s30 = scalar_lea.vmem %s30_s24, 256  ;;  %p2112_p6 = scmp.lt.s32.totalorder %s30_s24, %s30_s24 }
  0x11   :  { %p2108_p5 = scmp.ne.s32.totalorder %s30_s24, %s2107_s30  ;;  %p2113_p7 = scmp.lt.s32.totalorder %s2107_s30, %s2107_s30 }
  0x13   :  { %p2114_p8 = por %p2113_p7, %p2112_p6 }
  0x15   :  { %p2115_p9 = pnand %p2114_p8, %p2108_p5 }
  0x17   :  { %2118 = shalt.err (!%p2115_p9)
}
  0x18   :  { %s2545_s18 = sld [smem:[#allocation12_spill]]  ;;  %s2169_s19 = smov [#allocation7]  }
  0x19   :  { %s65_s20 = sshll.u32 %s2169_s19, 4  ;;  %s66_s20 = int_to_ptr.vmem [resolvable:$true] %s65_s20 }
  0x1a   :  { %s2127_s21 = scalar_lea.vmem %s66_s20, 512  ;;  %p2132_p11 = scmp.lt.s32.totalorder %s66_s20, %s66_s20 }
  0x1b   :  { %p2128_p10 = scmp.ne.s32.totalorder %s66_s20, %s2127_s21  ;;  %p2133_p12 = scmp.lt.s32.totalorder %s2127_s21, %s2127_s21 }
  0x1d   :  { %p2134_p13 = por %p2133_p12, %p2132_p11 }
  0x1e   :  { %35 = dma.hbm_to_vmem [thread:$0]  %s2545_s18, 256, %s30_s24, [#allocation3], %s2167_s26, %s2167_s26, %s2168_s27  }
  0x1f   :  { %p2135_p0 = pnand %p2134_p13, %p2128_p10 }
  0x21   :  { %2138 = shalt.err (!%p2135_p0)
}
  0x22   :  { %71 = dma.hbm_to_vmem [thread:$0]  %s2535_s8, 512, %s66_s20, [#allocation6], %s2167_s26, %s2167_s26, %s2168_s27  }
  0x23   :  { %2159 = dma.done.wait [#allocation3], 256  }
  0x24   :  { %2160 = vsyncadd [#allocation3], 4294967040 }
  0x25   :  { %2161 = dma.done.wait [#allocation6], 768  }
  0x26   :  { %2162 = vsyncadd [#allocation6], 4294966528  ;;  %v104_v0 = vld [vmem:[%s2529_s2 + $0x18] sm:$0xff]  ;;  %v103_v1 = vld [vmem:[%s2529_s2 + $0x10] sm:$0xff]  ;;  %vm112_vm0 = vcmask 261120   ;;  %s2170_s25 = smov 88   ;;  %v288_v32 = vlaneseq }
  0x27   :  { %1897 = vmatprep.subr.mxu0 %v104_v0  ;;  %v2288_v2 = vld [vmem:[#allocation2] sm:$0xff]  ;;  %v97_v3 = vld [vmem:[#allocation5] sm:$0xff]  ;;  %v102_v4 = vld [vmem:[%s2529_s2 + $0x8] sm:$0xff]  ;;  %vm339_vm1 = vcmask 64512   ;;  %v2173_v39 = vmov -1e+30  }
  0x28   :  { %1898 = vmatpush3.msra.mxu0 %v104_v0  ;;  %v99_v5 = vadd.f32 %v97_v3, %v2288_v2  ;;  %v2294_v6 = vld [vmem:[#allocation2 + $0x8] sm:$0xff]  ;;  %v98_v7 = vld [vmem:[#allocation5 + $0x8] sm:$0xff]  ;;  %1916 = vmatprep.mubr.msk.f32.mxu1 %vm112_vm0, %v2288_v2  ;;  %v101_v8 = vld [vmem:[%s2529_s2] sm:$0xff]  ;;  %v289_v33 = vshrl.u32 %v288_v32, 7  ;;  %v316_v35 = vand.u32 127, %v288_v32  ;;  %vm425_vm4 = vcmask 130048  }
  0x29   :  { %1899 = vmatprep.subr.mxu0 %v103_v1  ;;  %v100_v9 = vadd.f32 %v98_v7, %v2294_v6  ;;  %v199_v10 = vld [vmem:[%s2531_s4 + $0x18] sm:$0xff]  ;;  %v198_v11 = vld [vmem:[%s2531_s4 + $0x10] sm:$0xff]  ;;  %v197_v12 = vld [vmem:[%s2531_s4 + $0x8] sm:$0xff]  ;;  %s2175_s8 = smov 112   ;;  %s2176_s30 = smov 72   ;;  %vm1628_vm5 = vcmask 523264  }
  0x2a   :  { %1900 = vmatpush3.msra.mxu0 %v103_v1  ;;  %1905 = vmatprep.mubr.msk.f32.mxu0 %vm112_vm0, %v99_v5  ;;  %v196_v13 = vld [vmem:[%s2531_s4] sm:$0xff]  ;;  %s2171_s4 = smov 96   ;;  %v290_v34 = vadd.s32 8, %v289_v33  ;;  %v321_v37 = vand.u32 1, %v316_v35  ;;  %v295_v38 = vand.u32 1, %v289_v33  ;;  %s2177_s0 = smov 104  }
  0x2b   :  { %1901 = vmatprep.subr.mxu0 %v102_v4  ;;  %1908 = vmatprep.subr.mxu1 %v199_v10  ;;  %v1776_v14 = vld [vmem:[%s2530_s3] ss:$0 sm:$0xff]  ;;  %s2172_s3 = smov 120  }
  0x2c   :  { %1902 = vmatpush3.msra.mxu0 %v102_v4  ;;  %1909 = vmatpush3.msra.mxu1 %v199_v10  ;;  %v1779_v24 = vld [vmem:[%s2532_s5] ss:$0 sm:$0xff]  ;;  %v302_v36 = vand.u32 1, %v290_v34  ;;  %vm329_vm3 = vcmp.eq.s32.totalorder %v295_v38, %v321_v37  ;;  %s2174_s5 = smov 80  }
  0x2d   :  { %1903 = vmatprep.subr.mxu0 %v101_v8  ;;  %1910 = vmatprep.subr.mxu1 %v198_v11  ;;  %v2366_v42 = vsel %vm329_vm3, 0.0, %v2173_v39 }
  0x2e   :  { %1904 = vmatpush3.msra.mxu0 %v101_v8  ;;  %1911 = vmatpush3.msra.mxu1 %v198_v11  ;;  %vm330_vm2 = vcmp.eq.s32.totalorder %v302_v36, %v321_v37 }
  0x2f   :  { %1906 = vmatmul.mubr.msk.f32.vlgmr.msra.gmra.mxu0 %vm112_vm0, %v100_v9  ;;  %1912 = vmatprep.subr.mxu1 %v197_v12  ;;  %v2364_v40 = vsel %vm330_vm2, 0.0, %v2173_v39 }
  0x30   :  { %1913 = vmatpush3.msra.mxu1 %v197_v12 }
  0x31   :  { %1914 = vmatprep.subr.mxu1 %v196_v13 }
  0x32   :  { %1915 = vmatpush3.msra.mxu1 %v196_v13 }
  0x33   :  { %1917 = vmatmul.mubr.msk.f32.vlgmr.msra.gmra.mxu1 %vm112_vm0, %v2294_v6 }
  0xef   :  { %v1907_v15 = vpop.f32.mrf.mxu0 }
  0xf0   :  { %v2321_v16 = vadd.f32 %v1907_v15, %v1776_v14 }
  0xf1   :  { %v185_v17 = vpop.f32.mrf.mxu0 }
  0xf2   :  { %v2323_v18 = vadd.f32 %v1776_v14, %v185_v17  ;;  %536 = vrot.lane.b32.xlu1 %v2321_v16, %s2170_s25  ;;  %337 = vrot.lane.b32.xlu0 %v2321_v16, %s2171_s4  ;;  %v2335_v20 = vmul.f32 0.35355338, %v2321_v16 }
  0xf3   :  { %v1918_v21 = vpop.f32.mrf.mxu1 }
  0xf4   :  { %v2328_v19 = vmul.f32 0.35355338, %v2323_v18  ;;  %v2348_v25 = vadd.f32 %v1918_v21, %v1779_v24 }
  0xf5   :  { %v279_v26 = vpop.f32.mrf.mxu1 }
  0xf6   :  { %534 = vrot.lane.b32.xlu1 %v2323_v18, %s2170_s25  ;;  %335 = vrot.lane.b32.xlu0 %v2323_v18, %s2171_s4  ;;  %v2354_v29 = vadd.f32 %v1779_v24, %v279_v26  ;;  %v732_v24 = vld [vmem:[%s2533_s6 + $0x8] sm:$0xff]  ;;  %s2178_s25 = smov [#allocation8]  }
  0xf7   :  { %1923 = vmatprep.mubr.msk.f32.mxu0 %vm339_vm1, %v2328_v19  ;;  %s1763_s4 = sshll.u32 %s2178_s25, 4  ;;  %s1764_s4 = int_to_ptr.vmem [resolvable:$true] %s1763_s4 }
  0xf8   :  { %p2144_p2 = scmp.lt.s32.totalorder %s1764_s4, %s1764_s4 }
  0xfa   :  { %532 = vrot.lane.b32.xlu1 %v2335_v20, %s2172_s3  ;;  %530 = vrot.lane.b32.xlu0 %v2328_v19, %s2172_s3 }
 0x164   :  { %v537_v22 = vpop.permute.xlu1 %536  ;;  %v338_v23 = vpop.permute.xlu0 %337 }
 0x165   :  { %1919 = vmatprep.subr.msk.mxu0 %vm339_vm1, %v338_v23  ;;  %1933 = vmatprep.subr.msk.mxu1 %vm339_vm1, %v537_v22 }
 0x166   :  { %1920 = vmatpush3.xpose.msk.msra.mxu0 %vm339_vm1, %v338_v23  ;;  %1934 = vmatpush3.xpose.msk.msra.mxu1 %vm339_vm1, %v537_v22 }
 0x168   :  { %v535_v27 = vpop.permute.xlu1 %534  ;;  %v336_v28 = vpop.permute.xlu0 %335 }
 0x169   :  { %1921 = vmatprep.subr.msk.mxu0 %vm339_vm1, %v336_v28  ;;  %1935 = vmatprep.subr.msk.mxu1 %vm339_vm1, %v535_v27 }
 0x16a   :  { %1922 = vmatpush3.xpose.msk.msra.mxu0 %vm339_vm1, %v336_v28  ;;  %1936 = vmatpush3.xpose.msk.msra.mxu1 %vm339_vm1, %v535_v27 }
 0x16b   :  { %1926 = vmatprep.subr.mxu0 %v2348_v25 }
 0x16c   :  { %v533_v30 = vpop.permute.xlu1 %532  ;;  %v531_v31 = vpop.permute.xlu0 %530 }
 0x16d   :  { %1924 = vmatmul.mubr.msk.f32.vlgmr.msra.gmra.mxu0 %vm339_vm1, %v2335_v20  ;;  %1937 = vmatprep.mubr.msk.f32.mxu1 %vm339_vm1, %v531_v31 }
 0x16e   :  { %1938 = vmatmul.mubr.msk.f32.vlgmr.msra.gmra.mxu1 %vm339_vm1, %v533_v30  ;;  %1927 = vmatpush3.msra.mxu0 %v2348_v25  ;;  %v529_v30 = vld [vmem:[%s2533_s6] sm:$0xff] }
 0x16f   :  { %1928 = vmatprep.subr.mxu0 %v2354_v29  ;;  %1952 = vmatprep.subr.mxu1 %v529_v30 }
 0x170   :  { %1929 = vmatpush3.msra.mxu0 %v2354_v29  ;;  %1953 = vmatpush3.msra.mxu1 %v529_v30 }
 0x22d   :  { %v1925_v41 = vpop.f32.mrf.mxu0 }
 0x22e   :  { %v422_v43 = vadd.f32 %v1925_v41, %v2364_v40  ;;  %v1939_v44 = vpop.f32.mrf.mxu1 }
 0x22f   :  { %v416_v45 = vpop.f32.mrf.mxu0  ;;  %v618_v51 = vadd.f32 %v1939_v44, %v2364_v40 }
 0x230   :  { %v417_v46 = vadd.f32 %v416_v45, %v2366_v42  ;;  %v612_v47 = vpop.f32.mrf.mxu1  ;;  %v429_v48 = vsel %vm425_vm4, %v422_v43, -inf }
 0x231   :  { %430 = vmax.xlane.f32.xlu1 %v429_v48  ;;  %v613_v49 = vadd.f32 %v612_v47, %v2366_v42  ;;  %v624_v53 = vsel %vm425_vm4, %v618_v51, -inf }
 0x232   :  { %v426_v50 = vsel %vm425_vm4, %v417_v46, -inf }
 0x233   :  { %427 = vmax.xlane.f32.xlu0 %v426_v50  ;;  %v621_v52 = vsel %vm425_vm4, %v613_v49, -inf }
 0x237   :  { %622 = vmax.xlane.f32.xlu0 %v621_v52 }
 0x23b   :  { %625 = vmax.xlane.f32.xlu0 %v624_v53 }
 0x2ba   :  { %v431_v54 = vpop.xlane.xlu1 %430 }
 0x2bb   :  { %v433_v55 = vsub.f32 %v422_v43, %v431_v54 }
 0x2bc   :  { %v428_v56 = vpop.xlane.xlu0 %427 }
 0x2bd   :  { %v436_v57 = vmul.f32 1.442695, %v433_v55  ;;  %v432_v58 = vsub.f32 %v417_v46, %v428_v56 }
 0x2bf   :  { %2039 = vpow2.f32 %v436_v57  ;;  %v434_v59 = vmul.f32 1.442695, %v432_v58 }
 0x2c0   :  { %v623_v60 = vpop.xlane.xlu0 %622 }
 0x2c1   :  { %2041 = vpow2.f32 %v434_v59  ;;  %v627_v61 = vsub.f32 %v613_v49, %v623_v60 }
 0x2c3   :  { %v629_v62 = vmul.f32 1.442695, %v627_v61 }
 0x2c4   :  { %v626_v63 = vpop.xlane.xlu0 %625 }
 0x2c5   :  { %2043 = vpow2.f32 %v629_v62  ;;  %v628_v0 = vsub.f32 %v618_v51, %v626_v63 }
 0x2c7   :  { %v631_v1 = vmul.f32 1.442695, %v628_v0 }
 0x2c9   :  { %2045 = vpow2.f32 %v631_v1 }
 0x2cc   :  { %v2040_v3 = vpop.eup %2039 }
 0x2cd   :  { %v441_v4 = vsel %vm425_vm4, %v2040_v3, 0.0 }
 0x2ce   :  { %v2042_v5 = vpop.eup %2041  ;;  %442 = vadd.xlane.f32.xlu0 %v441_v4 }
 0x2cf   :  { %v438_v7 = vsel %vm425_vm4, %v2042_v5, 0.0 }
 0x2d0   :  { %439 = vadd.xlane.f32.xlu1 %v438_v7 }
 0x2d2   :  { %v2044_v8 = vpop.eup %2043 }
 0x2d3   :  { %v633_v9 = vsel %vm425_vm4, %v2044_v8, 0.0 }
 0x2d4   :  { %634 = vadd.xlane.f32.xlu1 %v633_v9 }
 0x2d6   :  { %v2046_v10 = vpop.eup %2045 }
 0x2d7   :  { %v636_v11 = vsel %vm425_vm4, %v2046_v10, 0.0 }
 0x2d8   :  { %637 = vadd.xlane.f32.xlu0 %v636_v11 }
 0x2e5   :  { %647 = vrot.lane.b32.xlu1 %v2348_v25, %s2172_s3 }
 0x2e9   :  { %901 = vrot.lane.b32.xlu1 %v2321_v16, %s2174_s5 }
 0x2ed   :  { %899 = vrot.lane.b32.xlu1 %v2323_v18, %s2174_s5 }
 0x2ee   :  { %645 = vrot.lane.b32.xlu0 %v2354_v29, %s2172_s3  ;;  %s2139_s3 = scalar_lea.vmem %s1764_s4, 256 }
 0x2ef   :  { %p2140_p1 = scmp.ne.s32.totalorder %s1764_s4, %s2139_s3  ;;  %p2145_p3 = scmp.lt.s32.totalorder %s2139_s3, %s2139_s3 }
 0x2f1   :  { %897 = vrot.lane.b32.xlu1 %v2335_v20, %s2175_s8  ;;  %p2146_p4 = por %p2145_p3, %p2144_p2 }
 0x2f2   :  { %895 = vrot.lane.b32.xlu0 %v2328_v19, %s2175_s8 }
 0x2f3   :  { %p2147_p5 = pnand %p2146_p4, %p2140_p1 }
 0x2f5   :  { %1183 = vrot.lane.b32.xlu1 %v2323_v18, %s2176_s30 }
 0x2f6   :  { %1185 = vrot.lane.b32.xlu0 %v2321_v16, %s2176_s30 }
 0x2f9   :  { %1181 = vrot.lane.b32.xlu1 %v2335_v20, %s2177_s0 }
 0x2fa   :  { %1179 = vrot.lane.b32.xlu0 %v2328_v19, %s2177_s0 }
 0x357   :  { %v443_v12 = vpop.xlane.xlu0 %442 }
 0x358   :  { %2047 = vrcp.f32 %v443_v12 }
 0x359   :  { %v440_v13 = vpop.xlane.xlu1 %439 }
 0x35a   :  { %2049 = vrcp.f32 %v440_v13 }
 0x35d   :  { %v635_v14 = vpop.xlane.xlu1 %634 }
 0x35e   :  { %2051 = vrcp.f32 %v635_v14 }
 0x361   :  { %v648_v15 = vpop.permute.xlu1 %647  ;;  %v638_v17 = vpop.xlane.xlu0 %637 }
 0x362   :  { %2053 = vrcp.f32 %v638_v17  ;;  %1940 = vmatprep.subr.mxu0 %v648_v15  ;;  %v1095_v17 = vld [vmem:[%s2533_s6 + $0x10] sm:$0xff] }
 0x365   :  { %v2048_v18 = vpop.eup %2047  ;;  %v646_v19 = vpop.permute.xlu0 %645 }
 0x366   :  { %v447_v22 = vmul.f32 %v2048_v18, %v2040_v3  ;;  %v902_v28 = vpop.permute.xlu1 %901 }
 0x367   :  { %v2050_v21 = vpop.eup %2049 }
 0x368   :  { %v446_v16 = vmul.f32 %v2050_v21, %v2042_v5 }
 0x369   :  { %v896_v33 = vpop.permute.xlu0 %895 }
 0x36a   :  { %1930 = vmatprep.mubr.msk.f32.mxu0 %vm425_vm4, %v446_v16  ;;  %v900_v35 = vpop.permute.xlu1 %899 }
 0x36b   :  { %v2052_v20 = vpop.eup %2051  ;;  %1931 = vmatmul.mubr.msk.f32.vlgmr.msra.gmra.mxu0 %vm425_vm4, %v447_v22 }
 0x36c   :  { %1941 = vmatpush3.msra.mxu0 %v648_v15  ;;  %v641_v23 = vmul.f32 %v2052_v20, %v2044_v8 }
 0x36d   :  { %1942 = vmatprep.subr.mxu0 %v646_v19  ;;  %v1186_v37 = vpop.permute.xlu0 %1185 }
 0x36e   :  { %1943 = vmatpush3.msra.mxu0 %v646_v19  ;;  %1944 = vmatprep.mubr.msk.f32.mxu0 %vm425_vm4, %v641_v23  ;;  %v898_v38 = vpop.permute.xlu1 %897 }
 0x36f   :  { %v2054_v26 = vpop.eup %2053  ;;  %1947 = vmatprep.subr.mxu0 %v732_v24 }
 0x370   :  { %v642_v27 = vmul.f32 %v2054_v26, %v2046_v10 }
 0x371   :  { %v1180_v39 = vpop.permute.xlu0 %1179 }
 0x372   :  { %1945 = vmatmul.mubr.msk.f32.vlgmr.msra.gmra.mxu0 %vm425_vm4, %v642_v27  ;;  %v1184_v41 = vpop.permute.xlu1 %1183 }
 0x373   :  { %1948 = vmatpush3.msra.mxu0 %v732_v24 }
 0x374   :  { %1957 = vmatprep.subr.msk.mxu0 %vm339_vm1, %v902_v28 }
 0x376   :  { %v1182_v43 = vpop.permute.xlu1 %1181 }
 0x42b   :  { %v1932_v31 = vpop.f32.mrf.mxu0 }
 0x42d   :  { %v520_v32 = vpop.f32.mrf.mxu0 }
 0x42e   :  { %1954 = vmatprep.mubr.msk.f32.mxu1 %vm339_vm1, %v520_v32 }
 0x42f   :  { %1955 = vmatmul.mubr.msk.f32.vlgmr.msra.gmra.mxu1 %vm339_vm1, %v1932_v31 }
 0x432   :  { %v1946_v34 = vpop.f32.mrf.mxu0 }
 0x434   :  { %v723_v36 = vpop.f32.mrf.mxu0 }
 0x435   :  { %1949 = vmatprep.mubr.msk.f32.mxu0 %vm339_vm1, %v723_v36  ;;  %v1379_v36 = vld [vmem:[%s2533_s6 + $0x18] sm:$0xff] }
 0x436   :  { %1950 = vmatmul.mubr.msk.f32.vlgmr.msra.gmra.mxu0 %vm339_vm1, %v1946_v34 }
 0x437   :  { %1958 = vmatpush3.xpose.msk.msra.mxu0 %vm339_vm1, %v902_v28  ;;  %1961 = vmatprep.mubr.msk.f32.mxu0 %vm339_vm1, %v896_v33 }
 0x438   :  { %1959 = vmatprep.subr.msk.mxu0 %vm339_vm1, %v900_v35 }
 0x43b   :  { %1960 = vmatpush3.xpose.msk.msra.mxu0 %vm339_vm1, %v900_v35 }
 0x43c   :  { %1976 = vmatprep.subr.msk.mxu0 %vm339_vm1, %v1186_v37 }
 0x43e   :  { %1962 = vmatmul.mubr.msk.f32.vlgmr.msra.gmra.mxu0 %vm339_vm1, %v898_v38 }
 0x43f   :  { %1977 = vmatpush3.xpose.msk.msra.mxu0 %vm339_vm1, %v1186_v37  ;;  %1980 = vmatprep.mubr.msk.f32.mxu0 %vm339_vm1, %v1180_v39 }
 0x440   :  { %1978 = vmatprep.subr.msk.mxu0 %vm339_vm1, %v1184_v41 }
 0x443   :  { %1979 = vmatpush3.xpose.msk.msra.mxu0 %vm339_vm1, %v1184_v41 }
 0x446   :  { %1981 = vmatmul.mubr.msk.f32.vlgmr.msra.gmra.mxu0 %vm339_vm1, %v1182_v43 }
 0x4ef   :  { %v1956_v44 = vpop.f32.mrf.mxu1 }
 0x4f1   :  { %v886_v27 = vpop.f32.mrf.mxu1 }
 0x4f6   :  { %v1951_v45 = vpop.f32.mrf.mxu0 }
 0x4f7   :  { %v2422_v46 = vadd.f32 %v1956_v44, %v1951_v45 }
 0x4f8   :  { %v2424_v47 = vpop.f32.mrf.mxu0 }
 0x4f9   :  { %v887_v38 = vadd.f32 %v886_v27, %v2424_v47  ;;  %v1614_v27 = vld [vmem:[%s2537_s10 + $0x8] sm:$0xff] }
 0x4fe   :  { %v1963_v48 = vpop.f32.mrf.mxu0 }
 0x4ff   :  { %v983_v49 = vadd.f32 %v1963_v48, %v2364_v40 }
 0x500   :  { %v977_v50 = vpop.f32.mrf.mxu0 }
 0x501   :  { %v978_v51 = vadd.f32 %v977_v50, %v2366_v42  ;;  %v989_v52 = vsel %vm425_vm4, %v983_v49, -inf }
 0x502   :  { %990 = vmax.xlane.f32.xlu1 %v989_v52 }
 0x503   :  { %v986_v53 = vsel %vm425_vm4, %v978_v51, -inf }
 0x504   :  { %987 = vmax.xlane.f32.xlu0 %v986_v53 }
 0x506   :  { %v1982_v54 = vpop.f32.mrf.mxu0 }
 0x507   :  { %v1267_v10 = vadd.f32 %v1982_v54, %v2364_v40 }
 0x508   :  { %v1261_v55 = vpop.f32.mrf.mxu0 }
 0x509   :  { %v1262_v56 = vadd.f32 %v1261_v55, %v2366_v42  ;;  %v1273_v12 = vsel %vm425_vm4, %v1267_v10, -inf }
 0x50b   :  { %v1270_v57 = vsel %vm425_vm4, %v1262_v56, -inf }
 0x513   :  { %1010 = vrot.lane.b32.xlu1 %v2348_v25, %s2175_s8 }
 0x537   :  { %1271 = vmax.xlane.f32.xlu1 %v1270_v57 }
 0x58b   :  { %v991_v58 = vpop.xlane.xlu1 %990 }
 0x58c   :  { %v993_v59 = vsub.f32 %v983_v49, %v991_v58 }
 0x58d   :  { %v988_v60 = vpop.xlane.xlu0 %987 }
 0x58e   :  { %v996_v61 = vmul.f32 1.442695, %v993_v59  ;;  %v992_v62 = vsub.f32 %v978_v51, %v988_v60  ;;  %v1814_v51 = vld [vmem:[%s2534_s7] ss:$0 sm:$0xff] }
 0x58f   :  { %v1011_v63 = vpop.permute.xlu1 %1010 }
 0x590   :  { %2055 = vpow2.f32 %v996_v61  ;;  %v994_v0 = vmul.f32 1.442695, %v992_v62  ;;  %1964 = vmatprep.subr.mxu1 %v1011_v63 }
 0x591   :  { %1965 = vmatpush3.msra.mxu1 %v1011_v63 }
 0x592   :  { %2057 = vpow2.f32 %v994_v0 }
 0x59d   :  { %v2056_v1 = vpop.eup %2055 }
 0x59e   :  { %v1001_v3 = vsel %vm425_vm4, %v2056_v1, 0.0 }
 0x59f   :  { %v2058_v4 = vpop.eup %2057  ;;  %1002 = vadd.xlane.f32.xlu0 %v1001_v3  ;;  %v1521_v3 = vld [vmem:[#allocation7 + $0x10] sm:$0xff] }
 0x5a0   :  { %v998_v42 = vsel %vm425_vm4, %v2058_v4, 0.0 }
 0x5a3   :  { %999 = vadd.xlane.f32.xlu0 %v998_v42  ;;  %v1519_v42 = vld [vmem:[#allocation7] sm:$0xff] }
 0x5b9   :  { %1008 = vrot.lane.b32.xlu0 %v2354_v29, %s2175_s8 }
 0x5c0   :  { %v1272_v5 = vpop.xlane.xlu1 %1271 }
 0x5c1   :  { %v1276_v7 = vsub.f32 %v1262_v56, %v1272_v5  ;;  %v1620_v5 = vld [vmem:[%s2537_s10 + $0x38] sm:$0xff] }
 0x5c3   :  { %v1278_v8 = vmul.f32 1.442695, %v1276_v7  ;;  %v1619_v7 = vld [vmem:[%s2537_s10 + $0x30] sm:$0xff] }
 0x5c5   :  { %2059 = vpow2.f32 %v1278_v8  ;;  %v1618_v8 = vld [vmem:[%s2537_s10 + $0x28] sm:$0xff] }
 0x5d2   :  { %v2060_v9 = vpop.eup %2059 }
 0x5d3   :  { %v1282_v11 = vsel %vm425_vm4, %v2060_v9, 0.0 }
 0x5d4   :  { %1283 = vadd.xlane.f32.xlu1 %v1282_v11 }
 0x5d8   :  { %1274 = vmax.xlane.f32.xlu0 %v1273_v12 }
 0x5e5   :  { %1294 = vrot.lane.b32.xlu1 %v2348_v25, %s2177_s0 }
 0x628   :  { %v1003_v13 = vpop.xlane.xlu0 %1002 }
 0x629   :  { %2061 = vrcp.f32 %v1003_v13 }
 0x62c   :  { %v1000_v14 = vpop.xlane.xlu0 %999 }
 0x62d   :  { %2063 = vrcp.f32 %v1000_v14 }
 0x630   :  { %v1009_v15 = vpop.permute.xlu0 %1008 }
 0x631   :  { %1966 = vmatprep.subr.mxu1 %v1009_v15 }
 0x632   :  { %1967 = vmatpush3.msra.mxu1 %v1009_v15 }
 0x633   :  { %1971 = vmatprep.subr.mxu1 %v1095_v17 }
 0x636   :  { %v2062_v40 = vpop.eup %2061 }
 0x637   :  { %v1007_v16 = vmul.f32 %v2062_v40, %v2056_v1  ;;  %v1522_v1 = vld [vmem:[#allocation7 + $0x18] sm:$0xff] }
 0x638   :  { %1995 = vmatprep.subr.mxu0 %v1522_v1 }
 0x639   :  { %1996 = vmatpush3.msra.mxu0 %v1522_v1  ;;  %v1824_v1 = vld [vmem:[%s2542_s15] ss:$0 sm:$0xff] }
 0x63a   :  { %v2064_v18 = vpop.eup %2063  ;;  %1997 = vmatprep.subr.mxu0 %v1521_v3 }
 0x63b   :  { %v1006_v21 = vmul.f32 %v2064_v18, %v2058_v4  ;;  %v1520_v4 = vld [vmem:[#allocation7 + $0x8] sm:$0xff]  ;;  %1998 = vmatpush3.msra.mxu0 %v1521_v3  ;;  %v1815_v18 = vld [vmem:[%s2539_s12] ss:$0 sm:$0xff] }
 0x63c   :  { %1999 = vmatprep.subr.mxu0 %v1520_v4 }
 0x63d   :  { %1968 = vmatprep.mubr.msk.f32.mxu1 %vm425_vm4, %v1006_v21  ;;  %2000 = vmatpush3.msra.mxu0 %v1520_v4 }
 0x63e   :  { %1969 = vmatmul.mubr.msk.f32.vlgmr.msra.gmra.mxu1 %vm425_vm4, %v1007_v16  ;;  %2001 = vmatprep.subr.mxu0 %v1519_v42 }
 0x63f   :  { %1972 = vmatpush3.msra.mxu1 %v1095_v17  ;;  %2002 = vmatpush3.msra.mxu0 %v1519_v42 }
 0x65d   :  { %v1284_v25 = vpop.xlane.xlu1 %1283 }
 0x661   :  { %v1295_v22 = vpop.permute.xlu1 %1294  ;;  %v1275_v20 = vpop.xlane.xlu0 %1274 }
 0x662   :  { %v1277_v19 = vsub.f32 %v1267_v10, %v1275_v20  ;;  %1983 = vmatprep.subr.mxu1 %v1295_v22  ;;  %v1816_v20 = vld [vmem:[%s2540_s13] ss:$0 sm:$0xff] }
 0x664   :  { %v1280_v23 = vmul.f32 1.442695, %v1277_v19 }
 0x666   :  { %2065 = vpow2.f32 %v1280_v23 }
 0x667   :  { %2067 = vrcp.f32 %v1284_v25 }
 0x673   :  { %v2066_v24 = vpop.eup %2065 }
 0x674   :  { %v1285_v26 = vsel %vm425_vm4, %v2066_v24, 0.0  ;;  %v2068_v28 = vpop.eup %2067 }
 0x675   :  { %1286 = vadd.xlane.f32.xlu0 %v1285_v26  ;;  %v1290_v33 = vmul.f32 %v2068_v28, %v2060_v9  ;;  %v1617_v9 = vld [vmem:[%s2537_s10 + $0x20] sm:$0xff]  ;;  %v1615_v26 = vld [vmem:[%s2537_s10 + $0x10] sm:$0xff] }
 0x676   :  { %v1613_v28 = vld [vmem:[%s2537_s10] sm:$0xff] }
 0x68b   :  { %1292 = vrot.lane.b32.xlu0 %v2354_v29, %s2177_s0 }
 0x6fe   :  { %v1970_v30 = vpop.f32.mrf.mxu1  ;;  %v1287_v31 = vpop.xlane.xlu0 %1286 }
 0x6ff   :  { %2069 = vrcp.f32 %v1287_v31 }
 0x700   :  { %v1086_v32 = vpop.f32.mrf.mxu1 }
 0x701   :  { %1973 = vmatprep.mubr.msk.f32.mxu1 %vm339_vm1, %v1086_v32 }
 0x702   :  { %1974 = vmatmul.mubr.msk.f32.vlgmr.msra.gmra.mxu1 %vm339_vm1, %v1970_v30  ;;  %v1293_v34 = vpop.permute.xlu0 %1292  ;;  %v1817_v30 = vld [vmem:[%s2536_s9] ss:$0 sm:$0xff] }
 0x703   :  { %1984 = vmatpush3.msra.mxu1 %v1295_v22  ;;  %1987 = vmatprep.mubr.msk.f32.mxu1 %vm425_vm4, %v1290_v33 }
 0x704   :  { %1985 = vmatprep.subr.mxu1 %v1293_v34 }
 0x705   :  { %1986 = vmatpush3.msra.mxu1 %v1293_v34 }
 0x706   :  { %1990 = vmatprep.subr.mxu1 %v1379_v36 }
 0x70c   :  { %v2070_v35 = vpop.eup %2069 }
 0x70d   :  { %v1291_v29 = vmul.f32 %v2070_v35, %v2066_v24  ;;  %v1616_v24 = vld [vmem:[%s2537_s10 + $0x18] sm:$0xff] }
 0x70f   :  { %1988 = vmatmul.mubr.msk.f32.vlgmr.msra.gmra.mxu1 %vm425_vm4, %v1291_v29 }
 0x710   :  { %1991 = vmatpush3.msra.mxu1 %v1379_v36  ;;  %v1820_v36 = vld [vmem:[%s2538_s11] ss:$0 sm:$0xff] }
 0x711   :  { %2006 = vmatprep.subr.mxu1 %v1620_v5 }
 0x7c2   :  { %v1975_v37 = vpop.f32.mrf.mxu1 }
 0x7c3   :  { %v1178_v39 = vadd.f32 %v1975_v37, %v2422_v46 }
 0x7c4   :  { %v1168_v41 = vpop.f32.mrf.mxu1 }
 0x7c5   :  { %v1177_v43 = vadd.f32 %v1168_v41, %v887_v38 }
 0x7cf   :  { %v1989_v44 = vpop.f32.mrf.mxu1 }
 0x7d1   :  { %v1370_v45 = vpop.f32.mrf.mxu1 }
 0x7d2   :  { %1992 = vmatprep.mubr.msk.f32.mxu1 %vm339_vm1, %v1370_v45 }
 0x7d3   :  { %1993 = vmatmul.mubr.msk.f32.vlgmr.msra.gmra.mxu1 %vm339_vm1, %v1989_v44 }
 0x7d4   :  { %2007 = vmatpush3.msra.mxu1 %v1620_v5 }
 0x7d5   :  { %2008 = vmatprep.subr.mxu1 %v1619_v7 }
 0x7d6   :  { %2009 = vmatpush3.msra.mxu1 %v1619_v7 }
 0x7d7   :  { %2010 = vmatprep.subr.mxu1 %v1618_v8 }
 0x7d8   :  { %2011 = vmatpush3.msra.mxu1 %v1618_v8 }
 0x7d9   :  { %2012 = vmatprep.subr.mxu1 %v1617_v9 }
 0x7da   :  { %2013 = vmatpush3.msra.mxu1 %v1617_v9 }
 0x7db   :  { %2014 = vmatprep.subr.mxu1 %v1616_v24 }
 0x7dc   :  { %2015 = vmatpush3.msra.mxu1 %v1616_v24 }
 0x7dd   :  { %2016 = vmatprep.subr.mxu1 %v1615_v26 }
 0x7de   :  { %2017 = vmatpush3.msra.mxu1 %v1615_v26 }
 0x7df   :  { %2018 = vmatprep.subr.mxu1 %v1614_v27 }
 0x7e0   :  { %2019 = vmatpush3.msra.mxu1 %v1614_v27 }
 0x7e1   :  { %2020 = vmatprep.subr.mxu1 %v1613_v28 }
 0x7e2   :  { %2021 = vmatpush3.msra.mxu1 %v1613_v28 }
 0x893   :  { %v1994_v48 = vpop.f32.mrf.mxu1 }
 0x894   :  { %v1462_v49 = vadd.f32 %v1994_v48, %v1178_v39 }
 0x895   :  { %v1452_v50 = vpop.f32.mrf.mxu1 }
 0x896   :  { %v1464_v52 = vadd.f32 %v1462_v49, %v2294_v6  ;;  %v1461_v47 = vadd.f32 %v1452_v50, %v1177_v43 }
 0x898   :  { %v1463_v46 = vadd.f32 %v1461_v47, %v2288_v2  ;;  %v1473_v53 = vadd.f32 %v1814_v51, %v1464_v52 }
 0x89a   :  { %v1477_v54 = vsel %vm112_vm0, %v1473_v53, 0.0  ;;  %v1472_v55 = vadd.f32 %v1814_v51, %v1463_v46 }
 0x89b   :  { %1478 = vadd.xlane.f32.xlu0 %v1477_v54 }
 0x89c   :  { %v1474_v56 = vsel %vm112_vm0, %v1472_v55, 0.0 }
 0x89d   :  { %1475 = vadd.xlane.f32.xlu1 %v1474_v56 }
 0x924   :  { %v1479_v57 = vpop.xlane.xlu0 %1478 }
 0x925   :  { %v1482_v58 = vmul.f32 0.03125, %v1479_v57 }
 0x926   :  { %v1476_v59 = vpop.xlane.xlu1 %1475 }
 0x927   :  { %v1484_v60 = vsub.f32 %v1473_v53, %v1482_v58  ;;  %v1481_v61 = vmul.f32 0.03125, %v1476_v59 }
 0x929   :  { %v1483_v62 = vsub.f32 %v1472_v55, %v1481_v61  ;;  %v1486_v63 = vmul.f32 %v1484_v60, %v1484_v60 }
 0x92b   :  { %v1490_v6 = vsel %vm112_vm0, %v1486_v63, 0.0  ;;  %v1485_v0 = vmul.f32 %v1483_v62, %v1483_v62 }
 0x92c   :  { %1491 = vadd.xlane.f32.xlu0 %v1490_v6  ;;  %v1823_v6 = vld [vmem:[%s2541_s14] ss:$0 sm:$0xff] }
 0x92d   :  { %v1487_v2 = vsel %vm112_vm0, %v1485_v0, 0.0 }
 0x92e   :  { %1488 = vadd.xlane.f32.xlu1 %v1487_v2 }
 0x9b5   :  { %v1492_v10 = vpop.xlane.xlu0 %1491 }
 0x9b6   :  { %v1494_v11 = vmul.f32 0.03125, %v1492_v10 }
 0x9b7   :  { %v1489_v12 = vpop.xlane.xlu1 %1488 }
 0x9b8   :  { %v1496_v13 = vadd.f32 1e-05, %v1494_v11  ;;  %v1493_v14 = vmul.f32 0.03125, %v1489_v12 }
 0x9ba   :  { %2071 = vrsqrt.f32 %v1496_v13  ;;  %v1495_v15 = vadd.f32 1e-05, %v1493_v14 }
 0x9bc   :  { %2073 = vrsqrt.f32 %v1495_v15 }
 0x9c7   :  { %v2072_v17 = vpop.eup %2071 }
 0x9c8   :  { %v1500_v40 = vmul.f32 %v2072_v17, %v1484_v60 }
 0x9c9   :  { %v2074_v21 = vpop.eup %2073 }
 0x9ca   :  { %v1499_v16 = vmul.f32 %v2074_v21, %v1483_v62  ;;  %v1509_v25 = vmul.f32 %v1815_v18, %v1500_v40 }
 0x9cc   :  { %v1508_v22 = vmul.f32 %v1815_v18, %v1499_v16  ;;  %v1518_v23 = vadd.f32 %v1816_v20, %v1509_v25 }
 0x9ce   :  { %v1517_v19 = vadd.f32 %v1816_v20, %v1508_v22 }
 0x9d0   :  { %2003 = vmatprep.mubr.msk.f32.mxu0 %vm112_vm0, %v1517_v19 }
 0x9d1   :  { %2004 = vmatmul.mubr.msk.f32.vlgmr.msra.gmra.mxu0 %vm112_vm0, %v1518_v23 }
 0xa91   :  { %v2005_v31 = vpop.f32.mrf.mxu0 }
 0xa92   :  { %v1608_v32 = vadd.f32 %v2005_v31, %v1817_v30 }
 0xa93   :  { %v1602_v33 = vpop.f32.mrf.mxu0 }
 0xa94   :  { %v1603_v34 = vadd.f32 %v1817_v30, %v1602_v33  ;;  %v1612_v29 = vmax.f32 %v1608_v32, 0.0 }
 0xa96   :  { %v1611_v35 = vmax.f32 %v1603_v34, 0.0 }
 0xa98   :  { %2022 = vmatprep.mubr.msk.f32.mxu1 %vm1628_vm5, %v1611_v35 }
 0xa99   :  { %2023 = vmatmul.mubr.msk.f32.vlgmr.msra.gmra.mxu1 %vm1628_vm5, %v1612_v29 }
 0xb59   :  { %v2024_v37 = vpop.f32.mrf.mxu1 }
 0xb5a   :  { %v1707_v38 = vadd.f32 %v2024_v37, %v1820_v36 }
 0xb5b   :  { %v1701_v39 = vpop.f32.mrf.mxu1 }
 0xb5c   :  { %v1702_v41 = vadd.f32 %v1820_v36, %v1701_v39  ;;  %v1711_v43 = vadd.f32 %v1707_v38, %v1518_v23 }
 0xb5e   :  { %v1715_v44 = vsel %vm112_vm0, %v1711_v43, 0.0  ;;  %v1710_v45 = vadd.f32 %v1702_v41, %v1517_v19 }
 0xb5f   :  { %1716 = vadd.xlane.f32.xlu0 %v1715_v44 }
 0xb60   :  { %v1712_v48 = vsel %vm112_vm0, %v1710_v45, 0.0 }
 0xb61   :  { %1713 = vadd.xlane.f32.xlu1 %v1712_v48 }
 0xbe8   :  { %v1717_v49 = vpop.xlane.xlu0 %1716 }
 0xbe9   :  { %v1719_v50 = vmul.f32 0.03125, %v1717_v49 }
 0xbea   :  { %v1714_v51 = vpop.xlane.xlu1 %1713 }
 0xbeb   :  { %v1721_v52 = vsub.f32 %v1711_v43, %v1719_v50  ;;  %v1718_v47 = vmul.f32 0.03125, %v1714_v51 }
 0xbed   :  { %v1720_v46 = vsub.f32 %v1710_v45, %v1718_v47  ;;  %v1723_v53 = vmul.f32 %v1721_v52, %v1721_v52 }
 0xbef   :  { %v1727_v54 = vsel %vm112_vm0, %v1723_v53, 0.0  ;;  %v1722_v55 = vmul.f32 %v1720_v46, %v1720_v46 }
 0xbf0   :  { %1728 = vadd.xlane.f32.xlu0 %v1727_v54 }
 0xbf1   :  { %v1724_v56 = vsel %vm112_vm0, %v1722_v55, 0.0 }
 0xbf2   :  { %1725 = vadd.xlane.f32.xlu1 %v1724_v56 }
 0xc79   :  { %v1729_v57 = vpop.xlane.xlu0 %1728 }
 0xc7a   :  { %v1731_v58 = vmul.f32 0.03125, %v1729_v57 }
 0xc7b   :  { %v1726_v59 = vpop.xlane.xlu1 %1725 }
 0xc7c   :  { %v1733_v60 = vadd.f32 1e-05, %v1731_v58  ;;  %v1730_v61 = vmul.f32 0.03125, %v1726_v59 }
 0xc7e   :  { %2075 = vrsqrt.f32 %v1733_v60  ;;  %v1732_v62 = vadd.f32 1e-05, %v1730_v61 }
 0xc80   :  { %2077 = vrsqrt.f32 %v1732_v62 }
 0xc8b   :  { %v2076_v63 = vpop.eup %2075 }
 0xc8c   :  { %v1737_v0 = vmul.f32 %v2076_v63, %v1721_v52 }
 0xc8d   :  { %v2078_v2 = vpop.eup %2077 }
 0xc8e   :  { %v1736_v3 = vmul.f32 %v2078_v2, %v1720_v46  ;;  %v1746_v4 = vmul.f32 %v1823_v6, %v1737_v0 }
 0xc90   :  { %v1745_v42 = vmul.f32 %v1823_v6, %v1736_v3  ;;  %v1755_v5 = vadd.f32 %v1824_v1, %v1746_v4 }
 0xc92   :  { %v1754_v7 = vadd.f32 %v1824_v1, %v1745_v42  ;;  %1757 = vst.msk [vmem:[#allocation8 + $0x8] sm:$0xff] %vm112_vm0, %v1755_v5 }
 0xc94   :  { %1756 = vst.msk [vmem:[#allocation8] sm:$0xff] %vm112_vm0, %v1754_v7 }
 0xc95   :  { %2150 = shalt.err (!%p2147_p5)
}
 0xc96   :  { %1769 = dma.vmem_to_hbm [thread:$0]  %s1764_s4, 256, %s2543_s16, [#allocation4], %s2167_s26, %s2167_s26, %s2168_s27  }
 0xc97   :  { %2163 = dma.done.wait [#allocation4], 256  }
 0xc98   :  { %2164 = vsyncadd [#allocation4], 4294967040 }
 0xc99   :  { %1773 = vsyncpa [#allocation3], 1 }
 0xc9a   :  { %1774 = vsyncpa [#allocation6], 1 }
 0xc9b   :  { %1775 = vsyncpa [#allocation4], 1 }

</bundles_post_ra>
